<compile_context>
chip_gen: v7x
topology: tpu7x:2x2x1
jax: 0.10.0
libtpu: 0.0.40
codegen_flags: <defaults>
</compile_context>

<pallas_src>
import jax
import jax.numpy as jnp
from jax import lax
from jax.experimental import pallas as pl
from jax.experimental.pallas import tpu as pltpu


# ----------------------------------------------------------------------------
# Pallas kernel: per-tile BCE, negative-loss map and per-block partial sums.
# ----------------------------------------------------------------------------
def _bce_partials_kernel(pred_ref, gt_ref, mask_ref, neg_loss_ref, partials_ref):
    p = pred_ref[...].astype(jnp.float32)
    g = gt_ref[...].astype(jnp.float32)
    m = mask_ref[...].astype(jnp.float32)

    pos = jnp.logical_and(g > 0.5, m > 0.5)     # gt==1 & mask==1
    neg = jnp.logical_and(g <= 0.5, m > 0.5)    # gt==0 & mask==1

    # Binary cross entropy with torch-style log clamping at -100.
    log_p = jnp.maximum(jnp.log(p), -100.0)
    log_1mp = jnp.maximum(jnp.log(1.0 - p), -100.0)
    bce = -(g * log_p + (1.0 - g) * log_1mp)

    pos_loss = jnp.where(pos, bce, 0.0)
    neg_loss = jnp.where(neg, bce, 0.0)

    # Full negative-loss map (consumed by the dynamic-k top-k outside the kernel).
    neg_loss_ref[...] = neg_loss

    # Per-block partial sums, packed into one vreg-shaped (8, 128) slab:
    #   sublane 0: sum(bce * positive), sublane 1: positive count, sublane 2: negative count.
    s_pos_loss = jnp.sum(pos_loss)
    s_pos_cnt = jnp.sum(pos.astype(jnp.float32))
    s_neg_cnt = jnp.sum(neg.astype(jnp.float32))
    sub = lax.broadcasted_iota(jnp.int32, (8, 128), 0)
    slab = jnp.where(sub == 0, s_pos_loss,
           jnp.where(sub == 1, s_pos_cnt,
           jnp.where(sub == 2, s_neg_cnt, 0.0)))
    partials_ref[0] = slab


# ----------------------------------------------------------------------------
# Helpers
# ----------------------------------------------------------------------------
def _drop_channel(x):
    if x.ndim == 4:
        assert x.shape[1] == 1, "expected a single-channel map"
        return x.reshape(x.shape[0], x.shape[2], x.shape[3])
    return x


def _bce_terms_jax(p, g, m):
    """Plain-JAX BCE terms for the (tiny) ragged tail that the kernel does not cover."""
    p = p.astype(jnp.float32)
    g = g.astype(jnp.float32)
    m = m.astype(jnp.float32)
    pos = jnp.logical_and(g > 0.5, m > 0.5)
    neg = jnp.logical_and(g <= 0.5, m > 0.5)
    log_p = jnp.maximum(jnp.log(p), -100.0)
    log_1mp = jnp.maximum(jnp.log(1.0 - p), -100.0)
    bce = -(g * log_p + (1.0 - g) * log_1mp)
    pos_loss_sum = jnp.sum(jnp.where(pos, bce, 0.0))
    neg_loss = jnp.where(neg, bce, 0.0)
    return pos_loss_sum, jnp.sum(pos.astype(jnp.float32)), jnp.sum(neg.astype(jnp.float32)), neg_loss


# ----------------------------------------------------------------------------
# Wrapper
# ----------------------------------------------------------------------------
def balance_bce_loss_pallas(pred_binary, gt, mask, *, negative_ratio=3.0, eps=1e-6,
                            max_tile_rows=None):
    """Balanced (OHEM) binary cross-entropy of BalanceCrossEntropyLoss.

    pred_binary: (N,1,H,W) or (N,H,W) probabilities in [0,1]
    gt:          (N,1,H,W) or (N,H,W) binary ground truth
    mask:        (N,H,W) binary validity mask (assumed {0,1} valued, as in SegDetector)
    """
    pred2 = _drop_channel(pred_binary)
    gt2 = _drop_channel(gt)
    n, h, w = pred2.shape
    assert gt2.shape == (n, h, w) and mask.shape == (n, h, w)

    total = n * h * w

    # ---- lane-dense 2D layout (free reshapes only; never pad/copy the full arrays) ----
    lanes = w
    if w % 128 != 0:
        for cand in (1024, 512, 256, 128):
            if total % cand == 0 and total // cand >= 16:
                lanes = cand
                break
    rows = total // lanes
    p2d = pred2.reshape(rows, lanes)
    g2d = gt2.reshape(rows, lanes)
    m2d = mask.reshape(rows, lanes)

    # ---- tile sizing against a scoped-VMEM budget that is safe on v5e / v6e / v7x ----
    in_bytes = p2d.dtype.itemsize + g2d.dtype.itemsize + m2d.dtype.itemsize
    bytes_per_row = lanes * (in_bytes + 4)            # 3 input streams + f32 neg-loss output
    vmem_budget = 12 * 1024 * 1024                    # double-buffered stream budget
    tile_rows = vmem_budget // (2 * bytes_per_row)    # 2x: pipeline double buffering
    # sublane alignment: 8 for 4-byte, 16 for 2-byte, 32 for 1-byte inputs
    row_align = max(8, *(32 // x.dtype.itemsize for x in (p2d, g2d, m2d)))
    if max_tile_rows is not None:
        tile_rows = min(tile_rows, max_tile_rows)
    tile_rows = min(tile_rows, rows)
    tile_rows = int((tile_rows // row_align) * row_align)

    num_blocks = rows // tile_rows if tile_rows > 0 else 0
    main_rows = num_blocks * tile_rows

    pos_loss_sum = jnp.float32(0.0)
    pos_cnt = jnp.float32(0.0)
    neg_cnt_avail = jnp.float32(0.0)
    neg_loss_chunks = []

    if num_blocks > 0:
        io_spec = pl.BlockSpec((tile_rows, lanes), lambda i: (i, 0))
        pipeline_bytes = 2 * tile_rows * bytes_per_row
        vmem_limit = int(min(max(pipeline_bytes + (6 << 20), 16 << 20), 30 << 20))
        cost = pl.CostEstimate(
            flops=10 * main_rows * lanes,
            transcendentals=2 * main_rows * lanes,
            bytes_accessed=main_rows * lanes * (in_bytes + 4) + num_blocks * 8 * 128 * 4,
        )

        neg_main, partials = pl.pallas_call(
            _bce_partials_kernel,
            out_shape=(
                jax.ShapeDtypeStruct((main_rows, lanes), jnp.float32),
                jax.ShapeDtypeStruct((num_blocks, 8, 128), jnp.float32),
            ),
            grid=(num_blocks,),
            in_specs=[io_spec, io_spec, io_spec],
            out_specs=(
                io_spec,
                pl.BlockSpec((1, 8, 128), lambda i: (i, 0, 0)),
            ),
            compiler_params=pltpu.CompilerParams(
                dimension_semantics=("parallel",),   # independent blocks: both TCs on v7x
                vmem_limit_bytes=vmem_limit,
            ),
            cost_estimate=cost,
        )(p2d, g2d, m2d)

        sums = jnp.sum(partials[:, :3, 0], axis=0)
        pos_loss_sum = sums[0]
        pos_cnt = sums[1]
        neg_cnt_avail = sums[2]
        neg_loss_chunks.append(neg_main.reshape(-1))

    if main_rows < rows:
        # Ragged tail (< one tile): tiny slice handled in plain JAX — no full-array pad.
        t_pos_loss, t_pos_cnt, t_neg_cnt, t_neg_loss = _bce_terms_jax(
            p2d[main_rows:], g2d[main_rows:], m2d[main_rows:])
        pos_loss_sum = pos_loss_sum + t_pos_loss
        pos_cnt = pos_cnt + t_pos_cnt
        neg_cnt_avail = neg_cnt_avail + t_neg_cnt
        neg_loss_chunks.append(t_neg_loss.reshape(-1))

    neg_loss_flat = (neg_loss_chunks[0] if len(neg_loss_chunks) == 1
                     else jnp.concatenate(neg_loss_chunks))

    # OHEM: keep the `negative_count` hardest negatives (dynamic k -> masked sorted sum).
    # TODO(synk): dynamic-k top-k / global sort has no clean Pallas equivalent; done with jnp.sort.
    neg_cnt = jnp.minimum(neg_cnt_avail, jnp.floor(pos_cnt * negative_ratio))
    neg_sorted = jnp.sort(neg_loss_flat)[::-1]
    ranks = jnp.arange(neg_sorted.shape[0], dtype=jnp.int32)
    neg_topk_sum = jnp.sum(jnp.where(ranks < neg_cnt.astype(jnp.int32), neg_sorted, 0.0))

    return (pos_loss_sum + neg_topk_sum) / (pos_cnt + neg_cnt + eps)


def balance_bce_forward(pred, batch, negative_ratio=3.0, eps=1e-6):
    """Mirrors decoders/seg_detector_loss.py::BalanceBCELoss.forward."""
    loss = balance_bce_loss_pallas(pred["binary"], batch["gt"], batch["mask"],
                                   negative_ratio=negative_ratio, eps=eps)
    return loss, dict(dice_loss=loss)   # dict key kept from the original module


# ----------------------------------------------------------------------------
# Pure-JAX reference (mirror of BalanceCrossEntropyLoss.forward, binary gt/mask)
# ----------------------------------------------------------------------------
def _reference_balance_bce(pred, gt, mask, negative_ratio=3.0, eps=1e-6):
    p = _drop_channel(pred).astype(jnp.float32)
    g = _drop_channel(gt).astype(jnp.float32)
    m = mask.astype(jnp.float32)
    positive = g * m
    negative = (1.0 - g) * m
    pos_count = jnp.sum(positive)
    neg_count = jnp.minimum(jnp.sum(negative), jnp.floor(pos_count * negative_ratio))
    log_p = jnp.maximum(jnp.log(p), -100.0)
    log_1mp = jnp.maximum(jnp.log(1.0 - p), -100.0)
    bce = -(g * log_p + (1.0 - g) * log_1mp)
    pos_loss_sum = jnp.sum(bce * positive)
    neg_sorted = jnp.sort((bce * negative).reshape(-1))[::-1]
    ranks = jnp.arange(neg_sorted.shape[0], dtype=jnp.int32)
    neg_topk_sum = jnp.sum(jnp.where(ranks < neg_count.astype(jnp.int32), neg_sorted, 0.0))
    return (pos_loss_sum + neg_topk_sum) / (pos_count + neg_count + eps)


if __name__ == "__main__":
    key = jax.random.PRNGKey(0)

    def make_inputs(k, n, h, w):
        k1, k2, k3 = jax.random.split(k, 3)
        pred = jax.nn.sigmoid(jax.random.normal(k1, (n, 1, h, w), dtype=jnp.float32))
        gt = (jax.random.uniform(k2, (n, 1, h, w)) > 0.7).astype(jnp.float32)
        mask = (jax.random.uniform(k3, (n, h, w)) > 0.1).astype(jnp.float32)
        return pred, gt, mask

    configs = [
        # (n, h, w, max_tile_rows)
        (2, 32, 64, None),  # lane-dense reshape to (16, 256), single block
        (2, 32, 64, 8),     # same layout, two "parallel" blocks (partials path)
        (3, 25, 16, 32),    # (N*H, W) fallback layout + ragged tail outside the kernel
    ]
    for idx, (n, h, w, mtr) in enumerate(configs):
        pred, gt, mask = make_inputs(jax.random.fold_in(key, idx), n, h, w)
        loss = balance_bce_loss_pallas(pred, gt, mask, max_tile_rows=mtr)
        loss = jax.block_until_ready(loss)
        ref = _reference_balance_bce(pred, gt, mask)
        assert jnp.allclose(loss, ref, atol=1e-4, rtol=1e-4), (idx, float(loss), float(ref))

    # Module-style entry point (pred / batch dicts), as in BalanceBCELoss.forward.
    pred, gt, mask = make_inputs(key, 2, 32, 64)
    loss, metrics = balance_bce_forward({"binary": pred}, {"gt": gt, "mask": mask})
    loss = jax.block_until_ready(loss)
    ref = _reference_balance_bce(pred, gt, mask)
    assert jnp.allclose(loss, ref, atol=1e-4, rtol=1e-4), (float(loss), float(ref))
    assert jnp.allclose(metrics["dice_loss"], ref, atol=1e-4, rtol=1e-4)

    print("KERNEL_OK")
</pallas_src>

<mosaic_0001>
module attributes {stable_mosaic.version = 11 : i64} {
  func.func @_bce_partials_kernel(%arg0: i32, %arg1: memref<16x256xf32, #tpu.memory_space<vmem>>, %arg2: memref<16x256xf32, #tpu.memory_space<vmem>>, %arg3: memref<16x256xf32, #tpu.memory_space<vmem>>, %arg4: memref<16x256xf32, #tpu.memory_space<vmem>>, %arg5: memref<1x8x128xf32, #tpu.memory_space<vmem>>) attributes {dimension_semantics = [#tpu.dimension_semantics<parallel>], iteration_bounds = array<i64: 1>, scalar_prefetch = 0 : i64, scratch_operands = 0 : i64, tpu.core_type = #tpu.core_type<tc>, window_params = [{transform_indices = @transform_0, window_bounds = array<i64: 16, 256>}, {transform_indices = @transform_1, window_bounds = array<i64: 16, 256>}, {transform_indices = @transform_2, window_bounds = array<i64: 16, 256>}, {transform_indices = @transform_3, window_bounds = array<i64: 16, 256>}, {transform_indices = @transform_4, window_bounds = array<i64: 1, 8, 128>}]} {
    %c0 = arith.constant 0 : index
    %c0_0 = arith.constant 0 : index
    %0 = vector.load %arg1[%c0, %c0_0] : memref<16x256xf32, #tpu.memory_space<vmem>>, vector<16x256xf32>
    %c0_1 = arith.constant 0 : index
    %c0_2 = arith.constant 0 : index
    %1 = vector.load %arg2[%c0_1, %c0_2] : memref<16x256xf32, #tpu.memory_space<vmem>>, vector<16x256xf32>
    %c0_3 = arith.constant 0 : index
    %c0_4 = arith.constant 0 : index
    %2 = vector.load %arg3[%c0_3, %c0_4] : memref<16x256xf32, #tpu.memory_space<vmem>>, vector<16x256xf32>
    %cst = arith.constant 5.000000e-01 : f32
    %3 = vector.broadcast %cst : f32 to vector<16x256xf32>
    %4 = arith.cmpf ogt, %1, %3 : vector<16x256xf32>
    %cst_5 = arith.constant 5.000000e-01 : f32
    %5 = vector.broadcast %cst_5 : f32 to vector<16x256xf32>
    %6 = arith.cmpf ogt, %2, %5 : vector<16x256xf32>
    %7 = arith.andi %4, %6 : vector<16x256xi1>
    %cst_6 = arith.constant 5.000000e-01 : f32
    %8 = vector.broadcast %cst_6 : f32 to vector<16x256xf32>
    %9 = arith.cmpf ole, %1, %8 : vector<16x256xf32>
    %cst_7 = arith.constant 5.000000e-01 : f32
    %10 = vector.broadcast %cst_7 : f32 to vector<16x256xf32>
    %11 = arith.cmpf ogt, %2, %10 : vector<16x256xf32>
    %12 = arith.andi %9, %11 : vector<16x256xi1>
    %13 = math.log %0 : vector<16x256xf32>
    %cst_8 = arith.constant -1.000000e+02 : f32
    %14 = vector.broadcast %cst_8 : f32 to vector<16x256xf32>
    %15 = arith.maximumf %13, %14 : vector<16x256xf32>
    %cst_9 = arith.constant 1.000000e+00 : f32
    %16 = vector.broadcast %cst_9 : f32 to vector<16x256xf32>
    %17 = arith.subf %16, %0 : vector<16x256xf32>
    %18 = math.log %17 : vector<16x256xf32>
    %cst_10 = arith.constant -1.000000e+02 : f32
    %19 = vector.broadcast %cst_10 : f32 to vector<16x256xf32>
    %20 = arith.maximumf %18, %19 : vector<16x256xf32>
    %21 = arith.mulf %1, %15 : vector<16x256xf32>
    %cst_11 = arith.constant 1.000000e+00 : f32
    %22 = vector.broadcast %cst_11 : f32 to vector<16x256xf32>
    %23 = arith.subf %22, %1 : vector<16x256xf32>
    %24 = arith.mulf %23, %20 : vector<16x256xf32>
    %25 = arith.addf %21, %24 : vector<16x256xf32>
    %cst_12 = arith.constant 0.000000e+00 : f32
    %26 = vector.broadcast %cst_12 : f32 to vector<16x256xf32>
    %27 = arith.subf %26, %25 : vector<16x256xf32>
    %cst_13 = arith.constant 0.000000e+00 : f32
    %28 = vector.broadcast %cst_13 : f32 to vector<16x256xf32>
    %29 = arith.select %7, %27, %28 : vector<16x256xi1>, vector<16x256xf32>
    %cst_14 = arith.constant 0.000000e+00 : f32
    %30 = vector.broadcast %cst_14 : f32 to vector<16x256xf32>
    %31 = arith.select %12, %27, %30 : vector<16x256xi1>, vector<16x256xf32>
    %c0_15 = arith.constant 0 : index
    %c0_16 = arith.constant 0 : index
    %32 = vector.load %arg4[%c0_15, %c0_16] : memref<16x256xf32, #tpu.memory_space<vmem>>, vector<16x256xf32>
    tpu.vector_store %arg4[%c0_15, %c0_16], %31 {strides = array<i32>} : memref<16x256xf32, #tpu.memory_space<vmem>>, vector<16x256xf32>,
    %33 = vector.shape_cast %29 : vector<16x256xf32> to vector<1x16x256xf32>
    %cst_17 = arith.constant dense<0.000000e+00> : vector<1xf32>
    %34 = vector.multi_reduction <add>, %33, %cst_17 [1, 2] : vector<1x16x256xf32> to vector<1xf32>
    %35 = vector.shape_cast %34 : vector<1xf32> to vector<1x1x1xf32>
    %36 = vector.extract %35[0, 0, 0] : f32 from vector<1x1x1xf32>
    %37 = arith.extui %7 : vector<16x256xi1> to vector<16x256xi32>
    %38 = arith.sitofp %37 : vector<16x256xi32> to vector<16x256xf32>
    %39 = vector.shape_cast %38 : vector<16x256xf32> to vector<1x16x256xf32>
    %cst_18 = arith.constant dense<0.000000e+00> : vector<1xf32>
    %40 = vector.multi_reduction <add>, %39, %cst_18 [1, 2] : vector<1x16x256xf32> to vector<1xf32>
    %41 = vector.shape_cast %40 : vector<1xf32> to vector<1x1x1xf32>
    %42 = vector.extract %41[0, 0, 0] : f32 from vector<1x1x1xf32>
    %43 = arith.extui %12 : vector<16x256xi1> to vector<16x256xi32>
    %44 = arith.sitofp %43 : vector<16x256xi32> to vector<16x256xf32>
    %45 = vector.shape_cast %44 : vector<16x256xf32> to vector<1x16x256xf32>
    %cst_19 = arith.constant dense<0.000000e+00> : vector<1xf32>
    %46 = vector.multi_reduction <add>, %45, %cst_19 [1, 2] : vector<1x16x256xf32> to vector<1xf32>
    %47 = vector.shape_cast %46 : vector<1xf32> to vector<1x1x1xf32>
    %48 = vector.extract %47[0, 0, 0] : f32 from vector<1x1x1xf32>
    %49 = tpu.iota {dimensions = array<i32: 0>} : vector<8x128xi32>
    %c0_i32 = arith.constant 0 : i32
    %50 = vector.broadcast %c0_i32 : i32 to vector<8x128xi32>
    %51 = arith.cmpi eq, %49, %50 : vector<8x128xi32>
    %c1_i32 = arith.constant 1 : i32
    %52 = vector.broadcast %c1_i32 : i32 to vector<8x128xi32>
    %53 = arith.cmpi eq, %49, %52 : vector<8x128xi32>
    %c2_i32 = arith.constant 2 : i32
    %54 = vector.broadcast %c2_i32 : i32 to vector<8x128xi32>
    %55 = arith.cmpi eq, %49, %54 : vector<8x128xi32>
    %cst_20 = arith.constant 0.000000e+00 : f32
    %56 = vector.broadcast %48 : f32 to vector<8x128xf32>
    %57 = vector.broadcast %cst_20 : f32 to vector<8x128xf32>
    %58 = arith.select %55, %56, %57 : vector<8x128xi1>, vector<8x128xf32>
    %59 = vector.broadcast %42 : f32 to vector<8x128xf32>
    %60 = arith.select %53, %59, %58 : vector<8x128xi1>, vector<8x128xf32>
    %61 = vector.broadcast %36 : f32 to vector<8x128xf32>
    %62 = arith.select %51, %61, %60 : vector<8x128xi1>, vector<8x128xf32>
    %c0_21 = arith.constant 0 : index
    %c0_22 = arith.constant 0 : index
    %c0_23 = arith.constant 0 : index
    %63 = vector.load %arg5[%c0_21, %c0_22, %c0_23] : memref<1x8x128xf32, #tpu.memory_space<vmem>>, vector<1x8x128xf32>
    %64 = vector.shape_cast %63 : vector<1x8x128xf32> to vector<8x128xf32>
    %65 = vector.shape_cast %62 : vector<8x128xf32> to vector<1x8x128xf32>
    tpu.vector_store %arg5[%c0_21, %c0_22, %c0_23], %65 {strides = array<i32>} : memref<1x8x128xf32, #tpu.memory_space<vmem>>, vector<1x8x128xf32>,
    return
  }
  func.func @transform_0(%arg0: i32) -> (i32, i32) {
    %c0_i32 = arith.constant 0 : i32
    %c0_i32_0 = arith.constant 0 : i32
    return %arg0, %c0_i32 : i32, i32
  }
  func.func @transform_1(%arg0: i32) -> (i32, i32) {
    %c0_i32 = arith.constant 0 : i32
    %c0_i32_0 = arith.constant 0 : i32
    return %arg0, %c0_i32 : i32, i32
  }
  func.func @transform_2(%arg0: i32) -> (i32, i32) {
    %c0_i32 = arith.constant 0 : i32
    %c0_i32_0 = arith.constant 0 : i32
    return %arg0, %c0_i32 : i32, i32
  }
  func.func @transform_3(%arg0: i32) -> (i32, i32) {
    %c0_i32 = arith.constant 0 : i32
    %c0_i32_0 = arith.constant 0 : i32
    return %arg0, %c0_i32 : i32, i32
  }
  func.func @transform_4(%arg0: i32) -> (i32, i32, i32) {
    %c0_i32 = arith.constant 0 : i32
    %c0_i32_0 = arith.constant 0 : i32
    %c0_i32_1 = arith.constant 0 : i32
    return %arg0, %c0_i32, %c0_i32_0 : i32, i32, i32
  }
}

</mosaic_0001>

<bundles_post_ra>
// kernel: tpu_custom_call.1
= control target key start
LH: loop header
LB: loop body
LE: loop exit
PB: predicated region body
PF: predicated region fallthrough
CT: control target
= control target key end

     0   :  { %10 = vsyncpa [#allocation3], 0  ;;  %s633_s0 = inlined_call_operand.hbm [shape: f32[16,256], index: 0, kind: input, shape index: {}]   ;;  %s634_s1 = inlined_call_operand.hbm [shape: f32[16,256], index: 1, kind: input, shape index: {}]   ;;  %s635_s2 = inlined_call_operand.hbm [shape: f32[16,256], index: 2, kind: input, shape index: {}]   ;;  %s636_s3 = inlined_call_operand.hbm [shape: f32[16,256], index: 3, kind: output, shape index: {0}]   ;;  %s637_s4 = inlined_call_operand.hbm [shape: f32[1,8,128], index: 4, kind: output, shape index: {1}]  }
   0x1   :  { %11 = vsyncpa [#allocation6], 0 }
   0x2   :  { %12 = vsyncpa [#allocation4], 0 }
   0x3   :  { %13 = vsyncpa [#allocation10], 0  ;;  %s403_s15 = smov [#allocation5]   ;;  %s404_s17 = smov [#allocation2]  }
   0x4   :  { %s31_s16 = sshll.u32 %s403_s15, 4  ;;  %s19_s18 = sshll.u32 %s404_s17, 4  ;;  %s32_s16 = int_to_ptr.vmem [resolvable:$true] %s31_s16  ;;  %s436_s18 = int_to_ptr.vmem [resolvable:$true] %s19_s18 }
   0x5   :  { %s285_s21 = scalar_lea.hbm %s634_s1, 512 }
   0x6   :  { %p286_p0 = scmp.ne.s32.totalorder %s634_s1, %s285_s21  ;;  %p289_p1 = scmp.lt.u32.totalorder %s285_s21, %s634_s1 }
   0x8   :  { %p291_p2 = pnand %p289_p1, %p286_p0 }
   0xa   :  { %294 = shalt.err (!%p291_p2)
}
   0xb   :  { %s295_s26 = scalar_lea.vmem %s32_s16, 512  ;;  %p300_p4 = scmp.lt.s32.totalorder %s32_s16, %s32_s16 }
   0xc   :  { %p296_p3 = scmp.ne.s32.totalorder %s32_s16, %s295_s26  ;;  %p301_p5 = scmp.lt.s32.totalorder %s295_s26, %s295_s26 }
   0xe   :  { %p302_p6 = por %p301_p5, %p300_p4 }
  0x10   :  { %p303_p7 = pnand %p302_p6, %p296_p3 }
  0x12   :  { %306 = shalt.err (!%p303_p7)
}
  0x13   :  { %s405_s27 = smov 256   ;;  %s406_s28 = smov 16  }
  0x14   :  { %37 = dma.hbm_to_vmem [thread:$0]  %s634_s1, 512, %s32_s16, [#allocation6], %s405_s27, %s405_s27, %s406_s28  }
  0x15   :  { %s307_s7 = scalar_lea.hbm %s633_s0, 512 }
  0x16   :  { %p308_p8 = scmp.ne.s32.totalorder %s633_s0, %s307_s7  ;;  %p311_p9 = scmp.lt.u32.totalorder %s307_s7, %s633_s0 }
  0x18   :  { %p313_p10 = pnand %p311_p9, %p308_p8 }
  0x1a   :  { %316 = shalt.err (!%p313_p10)
}
  0x1b   :  { %s317_s12 = scalar_lea.vmem %s436_s18, 512  ;;  %p322_p12 = scmp.lt.s32.totalorder %s436_s18, %s436_s18 }
  0x1c   :  { %p318_p11 = scmp.ne.s32.totalorder %s436_s18, %s317_s12  ;;  %p323_p13 = scmp.lt.s32.totalorder %s317_s12, %s317_s12 }
  0x1e   :  { %p324_p0 = por %p323_p13, %p322_p12 }
  0x20   :  { %p325_p1 = pnand %p324_p0, %p318_p11 }
  0x22   :  { %328 = shalt.err (!%p325_p1)
}
  0x23   :  { %25 = dma.hbm_to_vmem [thread:$0]  %s633_s0, 512, %s436_s18, [#allocation3], %s405_s27, %s405_s27, %s406_s28  }
  0x24   :  { %s407_s14 = smov [#allocation7]   ;;  %s329_s19 = scalar_lea.hbm %s635_s2, 512 }
  0x25   :  { %s43_s15 = sshll.u32 %s407_s14, 4  ;;  %p330_p2 = scmp.ne.s32.totalorder %s635_s2, %s329_s19  ;;  %s44_s15 = int_to_ptr.vmem [resolvable:$true] %s43_s15 }
  0x26   :  { %p333_p3 = scmp.lt.u32.totalorder %s329_s19, %s635_s2 }
  0x28   :  { %p335_p4 = pnand %p333_p3, %p330_p2 }
  0x2a   :  { %338 = shalt.err (!%p335_p4)
}
  0x2b   :  { %s339_s24 = scalar_lea.vmem %s44_s15, 512  ;;  %p344_p6 = scmp.lt.s32.totalorder %s44_s15, %s44_s15 }
  0x2c   :  { %p340_p5 = scmp.ne.s32.totalorder %s44_s15, %s339_s24  ;;  %p345_p7 = scmp.lt.s32.totalorder %s339_s24, %s339_s24 }
  0x2e   :  { %p346_p8 = por %p345_p7, %p344_p6 }
  0x30   :  { %p347_p9 = pnand %p346_p8, %p340_p5 }
  0x32   :  { %350 = shalt.err (!%p347_p9)
}
  0x33   :  { %49 = dma.hbm_to_vmem [thread:$0]  %s635_s2, 512, %s44_s15, [#allocation6], %s405_s27, %s405_s27, %s406_s28  }
  0x34   :  { %395 = dma.done.wait [#allocation3], 512  }
  0x35   :  { %396 = vsyncadd [#allocation3], 4294966784 }
  0x36   :  { %397 = dma.done.wait [#allocation6], 1024  }
  0x37   :  { %398 = vsyncadd [#allocation6], 4294966272  ;;  %v488_v0 = vld [vmem:[#allocation5] sm:$0xff]  ;;  %v490_v1 = vld [vmem:[#allocation5 + $0x8] sm:$0xff]  ;;  %v408_v12 = vmov 0.0   ;;  %s409_s2 = smov [#allocation8]  }
  0x38   :  { %v492_v2 = vld [vmem:[#allocation5 + $0x10] sm:$0xff]  ;;  %v494_v3 = vld [vmem:[#allocation7] sm:$0xff]  ;;  %v496_v4 = vld [vmem:[#allocation7 + $0x8] sm:$0xff]  ;;  %vm83_vm0 = vcmp.le.f32.partialorder %v488_v0, 0.5  ;;  %vm84_vm1 = vcmp.le.f32.partialorder %v490_v1, 0.5  ;;  %v123_v40 = vsub.f32 1.0, %v488_v0 }
  0x39   :  { %v500_v5 = vld [vmem:[#allocation5 + $0x18] sm:$0xff]  ;;  %v502_v6 = vld [vmem:[#allocation7 + $0x10] sm:$0xff]  ;;  %vm75_vm2 = vcmp.gt.f32.partialorder %v494_v3, 0.5  ;;  %vm76_vm3 = vcmp.gt.f32.partialorder %v496_v4, 0.5  ;;  %vm85_vm4 = vcmp.le.f32.partialorder %v492_v2, 0.5  ;;  %v59_v9 = vld [vmem:[#allocation2] sm:$0xff] }
  0x3a   :  { %v504_v7 = vld [vmem:[#allocation7 + $0x18] sm:$0xff]  ;;  %vm77_vm5 = vcmp.gt.f32.partialorder %v502_v6, 0.5  ;;  %vm86_vm7 = vcmp.le.f32.partialorder %v500_v5, 0.5  ;;  %vm514_vm8 = vmand %vm83_vm0, %vm75_vm2  ;;  %v60_v10 = vld [vmem:[#allocation2 + $0x8] sm:$0xff]  ;;  %269 = vlog2.f32 %v59_v9  ;;  %v103_v16 = vsub.f32 1.0, %v59_v9  ;;  %s220_s25 = sshll.u32 %s409_s2, 4  ;;  %s221_s25 = int_to_ptr.vmem [resolvable:$true] %s220_s25 }
  0x3b   :  { %vm78_vm6 = vcmp.gt.f32.partialorder %v504_v7, 0.5  ;;  %vm520_vm9 = vmand %vm84_vm1, %vm76_vm3  ;;  %v251_v13 = vsel %vm514_vm8, 1.0, %v408_v12  ;;  %v61_v14 = vld [vmem:[#allocation2 + $0x10] sm:$0xff]  ;;  %v62_v15 = vld [vmem:[#allocation2 + $0x18] sm:$0xff]  ;;  %271 = vlog2.f32 %v60_v10  ;;  %v104_v19 = vsub.f32 1.0, %v60_v10  ;;  %s351_s26 = scalar_lea.vmem %s221_s25, 512  ;;  %p356_p11 = scmp.lt.s32.totalorder %s221_s25, %s221_s25 }
  0x3c   :  { %vm529_vm10 = vmand %vm85_vm4, %vm77_vm5  ;;  %v252_v18 = vsel %vm520_vm9, 1.0, %v408_v12  ;;  %273 = vlog2.f32 %v61_v14  ;;  %v105_v23 = vsub.f32 1.0, %v61_v14  ;;  %v106_v25 = vsub.f32 1.0, %v62_v15  ;;  %p352_p10 = scmp.ne.s32.totalorder %s221_s25, %s351_s26  ;;  %p357_p12 = scmp.lt.s32.totalorder %s351_s26, %s351_s26 }
  0x3d   :  { %vm540_vm11 = vmand %vm86_vm7, %vm78_vm6  ;;  %v253_v21 = vsel %vm529_vm10, 1.0, %v408_v12  ;;  %v191_v22 = vadd.f32 %v252_v18, %v251_v13  ;;  %275 = vlog2.f32 %v62_v15  ;;  %v124_v41 = vsub.f32 1.0, %v490_v1 }
  0x3e   :  { %v254_v24 = vsel %vm540_vm11, 1.0, %v408_v12  ;;  %277 = vlog2.f32 %v103_v16  ;;  %v125_v45 = vsub.f32 1.0, %v492_v2  ;;  %v126_v46 = vsub.f32 1.0, %v500_v5  ;;  %p358_p13 = por %p357_p12, %p356_p11 }
  0x3f   :  { %v192_v26 = vadd.f32 %v253_v21, %v191_v22  ;;  %279 = vlog2.f32 %v104_v19  ;;  %vm71_vm12 = vcmp.gt.f32.partialorder %v488_v0, 0.5  ;;  %vm72_vm13 = vcmp.gt.f32.partialorder %v490_v1, 0.5 }
  0x40   :  { %281 = vlog2.f32 %v105_v23  ;;  %vm562_vm14 = vmand %vm71_vm12, %vm75_vm2  ;;  %vm73_vm15 = vcmp.gt.f32.partialorder %v492_v2, 0.5  ;;  %vm74_vm0 = vcmp.gt.f32.partialorder %v500_v5, 0.5  ;;  %p359_p0 = pnand %p358_p13, %p352_p10 }
  0x41   :  { %v193_v27 = vadd.f32 %v254_v24, %v192_v26  ;;  %283 = vlog2.f32 %v106_v25  ;;  %vm570_vm1 = vmand %vm72_vm13, %vm76_vm3  ;;  %v247_v3 = vsel %vm562_vm14, 1.0, %v408_v12 }
  0x42   :  { %v248_v13 = vsel %vm570_vm1, 1.0, %v408_v12  ;;  %vm81_vm2 = vmand %vm73_vm15, %vm77_vm5 }
  0x43   :  { %194 = vadd.xlane.f32.xlu1 %v193_v27  ;;  %vm586_vm3 = vmand %vm74_vm0, %vm78_vm6  ;;  %v171_v21 = vadd.f32 %v248_v13, %v247_v3  ;;  %v249_v8 = vsel %vm81_vm2, 1.0, %v408_v12 }
  0x44   :  { %v270_v28 = vpop.eup %269 }
  0x45   :  { %v272_v29 = vpop.eup %271  ;;  %v92_v30 = vmul.f32 0.6931472, %v270_v28  ;;  %v172_v28 = vadd.f32 %v249_v8, %v171_v21 }
  0x46   :  { %v274_v31 = vpop.eup %273  ;;  %v94_v32 = vmul.f32 0.6931472, %v272_v29  ;;  %v250_v29 = vsel %vm586_vm3, 1.0, %v408_v12 }
  0x47   :  { %v276_v33 = vpop.eup %275  ;;  %v96_v34 = vmul.f32 0.6931472, %v274_v31  ;;  %v99_v35 = vmax.f32 %v92_v30, -100.0  ;;  %v173_v17 = vadd.f32 %v250_v29, %v172_v28 }
  0x48   :  { %v278_v36 = vpop.eup %277  ;;  %v98_v37 = vmul.f32 0.6931472, %v276_v33  ;;  %v100_v38 = vmax.f32 %v94_v32, -100.0 }
  0x49   :  { %v280_v39 = vpop.eup %279  ;;  %v101_v42 = vmax.f32 %v96_v34, -100.0  ;;  %v108_v43 = vmul.f32 0.6931472, %v278_v36  ;;  %v119_v52 = vmul.f32 %v99_v35, %v488_v0 }
  0x4a   :  { %v282_v44 = vpop.eup %281  ;;  %v102_v47 = vmax.f32 %v98_v37, -100.0  ;;  %v110_v48 = vmul.f32 0.6931472, %v280_v39  ;;  %v120_v55 = vmul.f32 %v100_v38, %v490_v1 }
  0x4b   :  { %v284_v49 = vpop.eup %283  ;;  %v112_v50 = vmul.f32 0.6931472, %v282_v44  ;;  %v115_v51 = vmax.f32 %v108_v43, -100.0  ;;  %v121_v57 = vmul.f32 %v101_v42, %v492_v2 }
  0x4c   :  { %v114_v53 = vmul.f32 0.6931472, %v284_v49  ;;  %v116_v54 = vmax.f32 %v110_v48, -100.0  ;;  %v122_v60 = vmul.f32 %v102_v47, %v500_v5 }
  0x4d   :  { %v117_v56 = vmax.f32 %v112_v50, -100.0  ;;  %v127_v58 = vmul.f32 %v123_v40, %v115_v51 }
  0x4e   :  { %v118_v59 = vmax.f32 %v114_v53, -100.0  ;;  %v128_v61 = vmul.f32 %v124_v41, %v116_v54 }
  0x4f   :  { %v129_v63 = vmul.f32 %v125_v45, %v117_v56  ;;  %v131_v0 = vadd.f32 %v127_v58, %v119_v52 }
  0x50   :  { %v130_v9 = vmul.f32 %v126_v46, %v118_v59  ;;  %v132_v10 = vadd.f32 %v128_v61, %v120_v55 }
  0x51   :  { %v133_v14 = vadd.f32 %v129_v63, %v121_v57  ;;  %v135_v2 = vsub.f32 0.0, %v131_v0 }
  0x52   :  { %v134_v15 = vadd.f32 %v130_v9, %v122_v60  ;;  %v136_v5 = vsub.f32 0.0, %v132_v10 }
  0x53   :  { %v137_v4 = vsub.f32 0.0, %v133_v14  ;;  %v143_v16 = vsel %vm514_vm8, %v135_v2, 0.0  ;;  %v139_v19 = vsel %vm562_vm14, %v135_v2, 0.0 }
  0x54   :  { %v138_v22 = vsub.f32 0.0, %v134_v15  ;;  %v144_v23 = vsel %vm520_vm9, %v136_v5, 0.0  ;;  %147 = vst [vmem:[#allocation8] sm:$0xff] %v143_v16  ;;  %v140_v6 = vsel %vm570_vm1, %v136_v5, 0.0 }
  0x55   :  { %v145_v7 = vsel %vm529_vm10, %v137_v4, 0.0  ;;  %148 = vst [vmem:[#allocation8 + $0x8] sm:$0xff] %v144_v23  ;;  %v141_v24 = vsel %vm81_vm2, %v137_v4, 0.0  ;;  %v151_v25 = vadd.f32 %v140_v6, %v139_v19 }
  0x56   :  { %v146_v26 = vsel %vm540_vm11, %v138_v22, 0.0  ;;  %149 = vst [vmem:[#allocation8 + $0x10] sm:$0xff] %v145_v7  ;;  %v142_v11 = vsel %vm586_vm3, %v138_v22, 0.0 }
  0x57   :  { %150 = vst [vmem:[#allocation8 + $0x18] sm:$0xff] %v146_v26  ;;  %v152_v27 = vadd.f32 %v151_v25, %v141_v24 }
  0x59   :  { %v153_v30 = vadd.f32 %v152_v27, %v142_v11 }
  0x5b   :  { %154 = vadd.xlane.f32.xlu0 %v153_v30 }
  0x5f   :  { %174 = vadd.xlane.f32.xlu0 %v173_v17 }
  0x60   :  { %362 = shalt.err (!%p359_p0)
}
  0x61   :  { %s363_s5 = scalar_lea.hbm %s636_s3, 512 }
  0x62   :  { %p364_p1 = scmp.ne.s32.totalorder %s636_s3, %s363_s5  ;;  %p367_p2 = scmp.lt.u32.totalorder %s363_s5, %s636_s3 }
  0x64   :  { %p369_p3 = pnand %p367_p2, %p364_p1 }
  0x66   :  { %372 = shalt.err (!%p369_p3)
}
  0x67   :  { %226 = dma.vmem_to_hbm [thread:$0]  %s221_s25, 512, %s636_s3, [#allocation4], %s405_s27, %s405_s27, %s406_s28   ;;  %v203_v50 = vlaneseq }
  0x68   :  { %s410_s12 = smov [#allocation9]  }
  0x69   :  { %v204_v51 = vshrl.u32 %v203_v50, 7  ;;  %s233_s1 = sshll.u32 %s410_s12, 4  ;;  %s234_s1 = int_to_ptr.vmem [resolvable:$true] %s233_s1 }
  0x6a   :  { %s373_s13 = scalar_lea.vmem %s234_s1, 128  ;;  %p378_p5 = scmp.lt.s32.totalorder %s234_s1, %s234_s1 }
  0x6b   :  { %vm207_vm4 = vcmp.eq.s32.totalorder %v204_v51, 2  ;;  %vm206_vm5 = vcmp.eq.s32.totalorder %v204_v51, 1  ;;  %vm205_vm6 = vcmp.eq.s32.totalorder %v204_v51, 0  ;;  %p374_p4 = scmp.ne.s32.totalorder %s234_s1, %s373_s13  ;;  %p379_p6 = scmp.lt.s32.totalorder %s373_s13, %s373_s13 }
  0x6d   :  { %p380_p7 = por %p379_p6, %p378_p5 }
  0x6f   :  { %p381_p8 = pnand %p380_p7, %p374_p4 }
  0xd0   :  { %v195_v12 = vpop.xlane.xlu1 %194 }
  0xd1   :  { %v196_v20 = vrot.slane %v195_v12, 4 }
  0xd3   :  { %v197_v31 = vadd.f32 %v196_v20, %v195_v12 }
  0xd5   :  { %v198_v35 = vrot.slane %v197_v31, 2 }
  0xd7   :  { %v199_v41 = vadd.f32 %v198_v35, %v197_v31 }
  0xd9   :  { %v200_v46 = vrot.slane %v199_v41, 1 }
  0xdb   :  { %v201_v49 = vadd.f32 %v200_v46, %v199_v41 }
  0xe8   :  { %v155_v32 = vpop.xlane.xlu0 %154 }
  0xe9   :  { %v156_v33 = vrot.slane %v155_v32, 4 }
  0xeb   :  { %v157_v34 = vadd.f32 %v156_v33, %v155_v32 }
  0xec   :  { %v175_v36 = vpop.xlane.xlu0 %174 }
  0xed   :  { %v158_v37 = vrot.slane %v157_v34, 2  ;;  %v176_v38 = vrot.slane %v175_v36, 4 }
  0xef   :  { %v177_v39 = vadd.f32 %v176_v38, %v175_v36  ;;  %v159_v40 = vadd.f32 %v158_v37, %v157_v34 }
  0xf1   :  { %v178_v42 = vrot.slane %v177_v39, 2  ;;  %v160_v43 = vrot.slane %v159_v40, 1 }
  0xf3   :  { %v179_v44 = vadd.f32 %v178_v42, %v177_v39  ;;  %v161_v45 = vadd.f32 %v160_v43, %v159_v40 }
  0xf5   :  { %255 = vpush %v161_v45  ;;  %v180_v47 = vrot.slane %v179_v44, 1 }
  0xf7   :  { %v181_v48 = vadd.f32 %v180_v47, %v179_v44 }
  0xf9   :  { %257 = vpush %v181_v48 }
  0xfa   :  { %259 = vpush %v201_v49 }
 0x126   :  { %s256_s3 = spop %255 }
 0x127   :  { %v212_v55 = vstv %s256_s3 }
 0x12a   :  { %s258_s27 = spop %257 }
 0x12b   :  { %v210_v52 = vstv %s258_s27  ;;  %s260_s28 = spop %259 }
 0x12c   :  { %v208_v53 = vstv %s260_s28 }
 0x12d   :  { %v209_v54 = vsel %vm207_vm4, %v208_v53, 0.0 }
 0x12e   :  { %v211_v56 = vsel %vm206_vm5, %v210_v52, %v209_v54 }
 0x12f   :  { %v213_v57 = vsel %vm205_vm6, %v212_v55, %v211_v56 }
 0x130   :  { %214 = vst [vmem:[#allocation9] sm:$0xff] %v213_v57 }
 0x131   :  { %384 = shalt.err (!%p381_p8)
}
 0x132   :  { %s385_s16 = scalar_lea.hbm %s637_s4, 128 }
 0x133   :  { %p386_p9 = scmp.ne.s32.totalorder %s637_s4, %s385_s16  ;;  %p389_p10 = scmp.lt.u32.totalorder %s385_s16, %s637_s4 }
 0x135   :  { %p391_p11 = pnand %p389_p10, %p386_p9 }
 0x137   :  { %394 = shalt.err (!%p391_p11)
}
 0x138   :  { %236 = dma.vmem_to_hbm [thread:$0]  %s234_s1, 128, %s637_s4, [#allocation10]  }
 0x139   :  { %399 = dma.done.wait [#allocation4], 512  }
 0x13a   :  { %400 = vsyncadd [#allocation4], 4294966784 }
 0x13b   :  { %401 = dma.done.wait [#allocation10], 128  }
 0x13c   :  { %402 = vsyncadd [#allocation10], 4294967168 }
 0x13d   :  { %243 = vsyncpa [#allocation3], 1 }
 0x13e   :  { %244 = vsyncpa [#allocation6], 1 }
 0x13f   :  { %245 = vsyncpa [#allocation4], 1 }
 0x140   :  { %246 = vsyncpa [#allocation10], 1 }

</bundles_post_ra>
